<compile_context>
chip_gen: v5e
topology: v5e:2x2
jax: 0.10.0
libtpu: 0.0.40
codegen_flags: <defaults>
</compile_context>

<pallas_src>
import functools

import jax
import jax.numpy as jnp
from jax import lax
from jax.experimental import pallas as pl
from jax.experimental.pallas import tpu as pltpu


def _linear_kernel(x_ref, w_ref, b_ref, o_ref):
    # x_ref: (tb, K) f32   | w_ref: (N, K) f32 (nn.Linear layout)
    # b_ref: (N, 1)  f32   | o_ref: (N, tb) f32  (lane-dense: tb on the lane axis)
    acc = lax.dot_general(
        w_ref[...], x_ref[...],
        dimension_numbers=(((1,), (1,)), ((), ())),   # contract on K == implicit W^T
        preferred_element_type=jnp.float32,
        precision=lax.Precision.HIGHEST,
    )
    o_ref[...] = (acc + b_ref[...]).astype(o_ref.dtype)


def _round_up(n, m):
    return ((n + m - 1) // m) * m


def _pick_row_tile(B, K, itemsize, block_b):
    """Row tile for x: bounded VMEM, lane-dense output (tb % 128 == 0 when tiling),
    and >= 2 grid steps for large B (so both v7x TensorCores participate)."""
    budget = 4 * 1024 * 1024  # bytes per x buffer; x2 for double-buffering
    row_bytes = K * itemsize
    cap = max(128, (budget // row_bytes) // 128 * 128)
    cap = min(cap, block_b)
    if B <= 256 and B * row_bytes <= budget:
        return B  # single full-extent tile (tiny batch)
    return min(cap, max(128, _round_up(pl.cdiv(B, 2), 128)))


@functools.partial(jax.jit, static_argnames=("block_b",))
def dummy_classify_block_pallas(x, weight, bias, *, block_b=1024):
    """Pallas path for nn.Linear forward: y = x @ weight.T + bias.

    x: (B, in_features); weight: (num_classes, in_features); bias: (num_classes,).
    """
    B, K = x.shape
    N = weight.shape[0]
    b2d = bias.reshape(N, 1)

    tb = _pick_row_tile(B, K, x.dtype.itemsize, block_b)
    grid = (pl.cdiv(B, tb),)  # ragged last tile is masked by Pallas

    flops = 2 * B * K * N
    bytes_accessed = (
        x.size * x.dtype.itemsize
        + weight.size * weight.dtype.itemsize
        + bias.size * bias.dtype.itemsize
        + B * N * x.dtype.itemsize
    )

    out_t = pl.pallas_call(
        _linear_kernel,
        out_shape=jax.ShapeDtypeStruct((N, B), x.dtype),
        grid=grid,
        in_specs=[
            pl.BlockSpec((tb, K), lambda i: (i, 0)),   # x: stream row tiles
            pl.BlockSpec((N, K), lambda i: (0, 0)),    # weight: resident, nn.Linear layout
            pl.BlockSpec((N, 1), lambda i: (0, 0)),    # bias: resident
        ],
        out_specs=pl.BlockSpec((N, tb), lambda i: (0, i)),  # lane-dense output tile
        compiler_params=pltpu.CompilerParams(
            dimension_semantics=("parallel",),         # shard B tiles across TCs (v7x)
        ),
        cost_estimate=pl.CostEstimate(
            flops=flops, transcendentals=0, bytes_accessed=bytes_accessed),
    )(x, weight, b2d)

    return out_t.T  # (B, N); tiny transpose vs. x traffic


def dummy_classify_block(x, weight, bias, *, block_b=1024, min_pallas_batch=1024):
    """Module-equivalent forward. Tiny batches (the module's nominal B=2) go to a
    fused XLA gemv — the op is ~KB-scale and pallas_call fixed overhead dominates —
    while large batches use the HBM-streaming Pallas kernel."""
    if x.shape[0] < min_pallas_batch:
        return x @ weight.T + bias
    return dummy_classify_block_pallas(x, weight, bias, block_b=block_b)


if __name__ == "__main__":
    # Small shapes consistent with the module (flattened-image classifier head):
    # in_features = 3*16*16, num_classes = 2, batch = 2.
    in_features = 3 * 16 * 16   # 768
    num_classes = 2

    key = jax.random.PRNGKey(0)
    kx, kw, kb, kx2 = jax.random.split(key, 4)

    # Deterministic, PyTorch-like uniform init.
    bound = 1.0 / (in_features ** 0.5)
    weight = jax.random.uniform(kw, (num_classes, in_features),
                                minval=-bound, maxval=bound, dtype=jnp.float32)
    bias = jax.random.uniform(kb, (num_classes,),
                              minval=-bound, maxval=bound, dtype=jnp.float32)

    def ref_fn(xv):
        return jnp.dot(xv, weight.T, precision=lax.Precision.HIGHEST) + bias

    # 1) Nominal module shape (B=2): exercise the Pallas kernel directly.
    x = jax.random.normal(kx, (2, in_features), dtype=jnp.float32)
    out = jax.block_until_ready(dummy_classify_block_pallas(x, weight, bias))
    assert out.shape == (2, num_classes)
    assert jnp.allclose(out, ref_fn(x), atol=1e-4, rtol=1e-4)

    # 2) Non-multiple batch: exercises the cdiv grid + masked ragged last tile.
    x2 = jax.random.normal(kx2, (300, in_features), dtype=jnp.float32)
    out2 = jax.block_until_ready(dummy_classify_block_pallas(x2, weight, bias))
    assert out2.shape == (300, num_classes)
    assert jnp.allclose(out2, ref_fn(x2), atol=1e-4, rtol=1e-4)

    # 3) Dispatcher (tiny batch -> XLA path) matches too.
    out3 = jax.block_until_ready(dummy_classify_block(x, weight, bias))
    assert jnp.allclose(out3, ref_fn(x), atol=1e-4, rtol=1e-4)

    print("KERNEL_OK")
</pallas_src>

<mosaic_0001>
module attributes {stable_mosaic.version = 11 : i64} {
  func.func @_linear_kernel(%arg0: i32, %arg1: memref<2x768xf32, #tpu.memory_space<vmem>>, %arg2: memref<2x768xf32, #tpu.memory_space<vmem>>, %arg3: memref<2x1xf32, #tpu.memory_space<vmem>>, %arg4: memref<2x2xf32, #tpu.memory_space<vmem>>) attributes {dimension_semantics = [#tpu.dimension_semantics<parallel>], iteration_bounds = array<i64: 1>, scalar_prefetch = 0 : i64, scratch_operands = 0 : i64, tpu.core_type = #tpu.core_type<tc>, window_params = [{transform_indices = @transform_0, window_bounds = array<i64: 2, 768>}, {pipeline_mode = #tpu.pipeline_mode<synchronous>, transform_indices = @transform_1, window_bounds = array<i64: 2, 768>}, {pipeline_mode = #tpu.pipeline_mode<synchronous>, transform_indices = @transform_2, window_bounds = array<i64: 2, 1>}, {transform_indices = @transform_3, window_bounds = array<i64: 2, 2>}]} {
    %c0 = arith.constant 0 : index
    %c0_0 = arith.constant 0 : index
    %0 = vector.load %arg2[%c0, %c0_0] : memref<2x768xf32, #tpu.memory_space<vmem>>, vector<2x768xf32>
    %c0_1 = arith.constant 0 : index
    %c0_2 = arith.constant 0 : index
    %1 = vector.load %arg1[%c0_1, %c0_2] : memref<2x768xf32, #tpu.memory_space<vmem>>, vector<2x768xf32>
    %cst = arith.constant dense<0.000000e+00> : vector<2x2xf32>
    %2 = tpu.matmul %0, %1, %cst {dimension_numbers = #tpu.dot_dimension_numbers<[1], [1], [0], [0], [0, 0, 1, 0], [], []>, precision = #tpu.contract_precision<fp32>} : vector<2x768xf32>, vector<2x768xf32>, vector<2x2xf32> -> vector<2x2xf32>
    %c0_3 = arith.constant 0 : index
    %c0_4 = arith.constant 0 : index
    %3 = vector.load %arg3[%c0_3, %c0_4] : memref<2x1xf32, #tpu.memory_space<vmem>>, vector<2x1xf32>
    %4 = vector.broadcast %3 : vector<2x1xf32> to vector<2x2xf32>
    %5 = arith.addf %2, %4 : vector<2x2xf32>
    %c0_5 = arith.constant 0 : index
    %c0_6 = arith.constant 0 : index
    %6 = vector.load %arg4[%c0_5, %c0_6] : memref<2x2xf32, #tpu.memory_space<vmem>>, vector<2x2xf32>
    tpu.vector_store %arg4[%c0_5, %c0_6], %5 {strides = array<i32>} : memref<2x2xf32, #tpu.memory_space<vmem>>, vector<2x2xf32>,
    return
  }
  func.func @transform_0(%arg0: i32) -> (i32, i32) {
    %c0_i32 = arith.constant 0 : i32
    %c0_i32_0 = arith.constant 0 : i32
    return %arg0, %c0_i32 : i32, i32
  }
  func.func @transform_1(%arg0: i32) -> (i32, i32) {
    %c0_i32 = arith.constant 0 : i32
    %c0_i32_0 = arith.constant 0 : i32
    %c0_i32_1 = arith.constant 0 : i32
    return %c0_i32, %c0_i32_0 : i32, i32
  }
  func.func @transform_2(%arg0: i32) -> (i32, i32) {
    %c0_i32 = arith.constant 0 : i32
    %c0_i32_0 = arith.constant 0 : i32
    %c0_i32_1 = arith.constant 0 : i32
    return %c0_i32, %c0_i32_0 : i32, i32
  }
  func.func @transform_3(%arg0: i32) -> (i32, i32) {
    %c0_i32 = arith.constant 0 : i32
    %c0_i32_0 = arith.constant 0 : i32
    return %c0_i32, %arg0 : i32, i32
  }
}

</mosaic_0001>

<bundles_post_ra>
// kernel: dummy_classify_block_pallas.1
= control target key start
LH: loop header
LB: loop body
LE: loop exit
PB: predicated region body
PF: predicated region fallthrough
CT: control target
= control target key end

     0   :  { %8 = vsyncpa [#allocation3], 0  ;;  %s1104_s0 = inlined_call_operand.hbm [shape: f32[2,768], index: 0, kind: input, shape index: {}]   ;;  %s1105_s1 = inlined_call_operand.hbm [shape: f32[2,768], index: 1, kind: input, shape index: {}]   ;;  %s1106_s2 = inlined_call_operand.vmem [shape: f32[2,1], index: 2, kind: input, shape index: {}]   ;;  %s1107_s3 = inlined_call_operand.vmem [shape: f32[2,2], index: 3, kind: output, shape index: {}]  }
   0x1   :  { %s15_s14 = sshll.u32 %s1104_s0, 4  ;;  %s16_s14 = int_to_ptr.hbm [resolvable:$true] %s15_s14 }
   0x2   :  { %9 = vsyncpa [#allocation5], 0  ;;  %s1026_s15 = smov [#allocation2]   ;;  %s26_s19 = sshll.u32 %s1105_s1, 4  ;;  %s27_s19 = int_to_ptr.hbm [resolvable:$true] %s26_s19 }
   0x3   :  { %s17_s16 = sshll.u32 %s1026_s15, 4  ;;  %s1027_s20 = smov [#allocation4]   ;;  %s18_s16 = int_to_ptr.vmem [resolvable:$true] %s17_s16 }
   0x4   :  { %20 = dma.hbm_to_vmem [thread:$0]  %s16_s14, 192, %s18_s16, [#allocation3]  }
   0x5   :  { %s28_s21 = sshll.u32 %s1027_s20, 4  ;;  %s29_s21 = int_to_ptr.vmem [resolvable:$true] %s28_s21 }
   0x6   :  { %31 = dma.hbm_to_vmem [thread:$0]  %s27_s19, 192, %s29_s21, [#allocation5]  }
   0x7   :  { %1022 = dma.done.wait [#allocation3], 192  }
   0x8   :  { %1023 = vsyncadd [#allocation3], 4294967104 }
   0x9   :  { %1024 = dma.done.wait [#allocation5], 192  }
   0xa   :  { %1025 = vsyncadd [#allocation5], 4294967104  ;;  %v42_v0 = vld [vmem:[#allocation4] sm:$0xff]  ;;  %v1028_v1 = vmov 0   ;;  %v44_v2 = vld [vmem:[#allocation2] sm:$0xff]  ;;  %vm962_vm0 = vcmask 9216  }
   0xb   :  { %54 = vst [vmem:[#allocation1] ss:$4 sm:$0xff] %v42_v0  ;;  %973 = vset.pattern.permute.xlu0 %v1028_v1  ;;  %v46_v3 = vld [vmem:[%s1106_s2] sm:$0x3]  ;;  %v43_v19 = vld [vmem:[#allocation4 + $0x8] sm:$0xf] }
   0xc   :  { %49 = vperm.xlu0 %973, %v46_v3   ;;  %56 = vst [vmem:[#allocation1 + $0x20] ss:$4 sm:$0xff] %v43_v19  ;;  %v45_v33 = vld [vmem:[#allocation2 + $0x8] sm:$0xf] }
  0x12   :  { %v57_v4 = vld.sshfl [vmem:[#allocation1] sm:$0xff pattern:$0x73625140]  ;;  %v58_v5 = vld.sshfl [vmem:[#allocation1 + $0x8] sm:$0xff pattern:$0x73625140] }
  0x13   :  { %v59_v6 = vld.sshfl [vmem:[#allocation1 + $0x10] sm:$0xff pattern:$0x73625140]  ;;  %v1058_v7 = vld.sshfl [vmem:[#allocation1 + $0x18] sm:$0xff pattern:$0x73625140] }
  0x14   :  { %71 = vst [vmem:[#allocation1] ss:$4 sm:$0xff] %v44_v2  ;;  %v1060_v8 = vand.u32 4294901760, %v57_v4  ;;  %v1063_v10 = vand.u32 4294901760, %v58_v5  ;;  %v1075_v36 = vand.u32 4294901760, %v59_v6  ;;  %v541_v48 = vand.u32 4294901760, %v1058_v7 }
  0x15   :  { %v61_v38 = vld.sshfl [vmem:[#allocation1 + $0x20] sm:$0xff pattern:$0x73625140]  ;;  %v1078_v39 = vld.sshfl [vmem:[#allocation1 + $0x28] sm:$0xff pattern:$0x73625140] }
  0x16   :  { %v104_v9 = vsub.f32 %v57_v4, %v1060_v8  ;;  %v1066_v15 = vsub.f32 %v58_v5, %v1063_v10  ;;  %73 = vst [vmem:[#allocation1 + $0x20] ss:$4 sm:$0xff] %v45_v33  ;;  %v396_v43 = vsub.f32 %v59_v6, %v1075_v36  ;;  %v542_v51 = vsub.f32 %v1058_v7, %v541_v48 }
  0x17   :  { %v687_v61 = vand.u32 4294901760, %v61_v38  ;;  %v833_v6 = vand.u32 4294901760, %v1078_v39 }
  0x18   :  { %v105_v11 = vand.u32 4294901760, %v104_v9  ;;  %v251_v25 = vand.u32 4294901760, %v1066_v15  ;;  %v397_v46 = vand.u32 4294901760, %v396_v43  ;;  %v543_v56 = vand.u32 4294901760, %v542_v51 }
  0x19   :  { %v688_v1 = vsub.f32 %v61_v38, %v687_v61 }
  0x1a   :  { %v106_v12 = vsub.f32 %v104_v9, %v105_v11  ;;  %v252_v32 = vsub.f32 %v1066_v15, %v251_v25  ;;  %v398_v50 = vsub.f32 %v396_v43, %v397_v46  ;;  %v544_v59 = vsub.f32 %v542_v51, %v543_v56 }
  0x1b   :  { %v74_v13 = vld.sshfl [vmem:[#allocation1] sm:$0xff pattern:$0x73625140]  ;;  %v75_v14 = vld.sshfl [vmem:[#allocation1 + $0x8] sm:$0xff pattern:$0x73625140] }
  0x1c   :  { %v101_v16 = vand.u32 4294901760, %v74_v13  ;;  %v247_v17 = vand.u32 4294901760, %v75_v14  ;;  %v107_v18 = vand.u32 4294901760, %v106_v12  ;;  %v76_v20 = vld.sshfl [vmem:[#allocation1 + $0x10] sm:$0xff pattern:$0x73625140] }
  0x1d   :  { %v77_v21 = vld.sshfl [vmem:[#allocation1 + $0x18] sm:$0xff pattern:$0x73625140]  ;;  %v1068_v24 = vand.u32 4294901760, %v76_v20  ;;  %v253_v41 = vand.u32 4294901760, %v252_v32  ;;  %v399_v53 = vand.u32 4294901760, %v398_v50 }
  0x1e   :  { %v128_v22 = vsub.f32 %v74_v13, %v101_v16  ;;  %102 = vmatpush.xpose.msra.mxu0 %v101_v16  ;;  %178 = vmatpush.xpose.msra.mxu3 %v101_v16  ;;  %v274_v23 = vsub.f32 %v75_v14, %v247_v17  ;;  %v1071_v28 = vand.u32 4294901760, %v77_v21  ;;  %v78_v52 = vld.sshfl [vmem:[#allocation1 + $0x20] sm:$0xff pattern:$0x73625140]  ;;  %v545_v63 = vand.u32 4294901760, %v544_v59 }
  0x1f   :  { %v420_v31 = vsub.f32 %v76_v20, %v1068_v24  ;;  %v79_v54 = vld.sshfl [vmem:[#allocation1 + $0x28] sm:$0xff pattern:$0x73625140]  ;;  %v685_v55 = vand.u32 4294901760, %v78_v52  ;;  %v689_v4 = vand.u32 4294901760, %v688_v1 }
  0x20   :  { %155 = vmatpush.xpose.msra.mxu2 %v128_v22  ;;  %v129_v26 = vand.u32 4294901760, %v128_v22  ;;  %v275_v27 = vand.u32 4294901760, %v274_v23  ;;  %v566_v37 = vsub.f32 %v77_v21, %v1071_v28  ;;  %v831_v57 = vand.u32 4294901760, %v79_v54 }
  0x21   :  { %108 = vmatmul.f32.vlgmr.msra.gmra.mxu0 %v107_v18  ;;  %182 = vmatmul.f32.vlgmr.msra.gmra.mxu3 %v105_v11  ;;  %v421_v40 = vand.u32 4294901760, %v420_v31  ;;  %v712_v58 = vsub.f32 %v78_v52, %v685_v55 }
  0x22   :  { %v130_v29 = vsub.f32 %v128_v22, %v129_v26  ;;  %204 = vmatpush.xpose.msrb.mxu0 %v129_v26  ;;  %v276_v30 = vsub.f32 %v274_v23, %v275_v27  ;;  %v567_v42 = vand.u32 4294901760, %v566_v37  ;;  %v858_v60 = vsub.f32 %v79_v54, %v831_v57 }
  0x23   :  { %158 = vmatmul.f32.vlgmr.msra.gmra.mxu2 %v104_v9  ;;  %v422_v44 = vsub.f32 %v420_v31, %v421_v40  ;;  %v713_v62 = vand.u32 4294901760, %v712_v58  ;;  %v834_v9 = vsub.f32 %v1078_v39, %v833_v6 }
  0x24   :  { %248 = vmatpush.xpose.msrb.mxu2 %v247_v17  ;;  %v131_v34 = vand.u32 4294901760, %v130_v29  ;;  %v277_v35 = vand.u32 4294901760, %v276_v30  ;;  %v568_v45 = vsub.f32 %v566_v37, %v567_v42  ;;  %v859_v0 = vand.u32 4294901760, %v858_v60 }
  0x25   :  { %v423_v47 = vand.u32 4294901760, %v422_v44  ;;  %v714_v2 = vsub.f32 %v712_v58, %v713_v62  ;;  %v835_v11 = vand.u32 4294901760, %v834_v9 }
  0x26   :  { %301 = vmatpush.xpose.msra.mxu0 %v274_v23  ;;  %132 = vmatpush.xpose.msra.mxu1 %v131_v34  ;;  %v569_v49 = vand.u32 4294901760, %v568_v45  ;;  %v860_v3 = vsub.f32 %v858_v60, %v859_v0 }
  0x27   :  { %278 = vmatpush.xpose.msrb.mxu3 %v277_v35  ;;  %v715_v5 = vand.u32 4294901760, %v714_v2  ;;  %v836_v12 = vsub.f32 %v834_v9, %v835_v11 }
  0x28   :  { %350 = vmatpush.xpose.msra.mxu2 %v275_v27  ;;  %v861_v7 = vand.u32 4294901760, %v860_v3 }
  0x29   :  { %134 = vmatmul.f32.vlgmr.msra.gmra.mxu1 %v1060_v8  ;;  %206 = vmatmul.f32.vlgmr.msrb.gmra.mxu0 %v1060_v8  ;;  %v837_v13 = vand.u32 4294901760, %v836_v12 }
  0x2a   :  { %226 = vmatpush.xpose.msrb.mxu1 %v101_v16  ;;  %280 = vmatmul.f32.vlgmr.msrb.gmra.mxu3 %v1063_v10 }
  0x2b   :  { %372 = vmatpush.xpose.msra.mxu3 %v247_v17  ;;  %254 = vmatmul.f32.vlgmr.msrb.gmra.mxu2 %v253_v41 }
  0x2c   :  { %394 = vmatpush.xpose.msrb.mxu0 %v1068_v24  ;;  %447 = vmatpush.xpose.msrb.mxu2 %v420_v31 }
  0x2e   :  { %324 = vmatpush.xpose.msra.mxu1 %v247_v17 }
  0x2f   :  { %470 = vmatpush.xpose.msrb.mxu3 %v1068_v24 }
  0x31   :  { %228 = vmatmul.f32.vlgmr.msrb.gmra.mxu1 %v1060_v8  ;;  %304 = vmatmul.f32.vlgmr.msra.gmra.mxu0 %v1066_v15  ;;  %v690_v8 = vsub.f32 %v688_v1, %v689_v4 }
  0x32   :  { %374 = vmatmul.f32.vlgmr.msra.gmra.mxu3 %v1063_v10  ;;  %424 = vmatpush.xpose.msrb.mxu1 %v423_v47 }
  0x33   :  { %352 = vmatmul.f32.vlgmr.msra.gmra.mxu2 %v1063_v10  ;;  %496 = vmatpush.xpose.msra.mxu0 %v421_v40  ;;  %v691_v10 = vand.u32 4294901760, %v690_v8 }
  0x34   :  { %540 = vmatpush.xpose.msra.mxu2 %v1071_v28  ;;  %570 = vmatpush.xpose.msra.mxu3 %v569_v49 }
  0x39   :  { %328 = vmatmul.f32.vlgmr.msra.gmra.mxu1 %v251_v25  ;;  %400 = vmatmul.f32.vlgmr.msrb.gmra.mxu0 %v399_v53 }
  0x3a   :  { %474 = vmatmul.f32.vlgmr.msrb.gmra.mxu3 %v397_v46  ;;  %518 = vmatpush.xpose.msra.mxu1 %v1068_v24 }
  0x3b   :  { %450 = vmatmul.f32.vlgmr.msrb.gmra.mxu2 %v396_v43  ;;  %593 = vmatpush.xpose.msrb.mxu0 %v566_v37 }
  0x3c   :  { %642 = vmatpush.xpose.msrb.mxu2 %v567_v42  ;;  %664 = vmatpush.xpose.msrb.mxu3 %v1071_v28 }
  0x41   :  { %426 = vmatmul.f32.vlgmr.msrb.gmra.mxu1 %v1075_v36  ;;  %498 = vmatmul.f32.vlgmr.msra.gmra.mxu0 %v1075_v36 }
  0x42   :  { %572 = vmatmul.f32.vlgmr.msra.gmra.mxu3 %v541_v48  ;;  %616 = vmatpush.xpose.msrb.mxu1 %v1071_v28 }
  0x43   :  { %546 = vmatmul.f32.vlgmr.msra.gmra.mxu2 %v545_v63  ;;  %686 = vmatpush.xpose.msra.mxu0 %v685_v55 }
  0x44   :  { %739 = vmatpush.xpose.msra.mxu2 %v712_v58  ;;  %762 = vmatpush.xpose.msra.mxu3 %v685_v55 }
  0x49   :  { %520 = vmatmul.f32.vlgmr.msra.gmra.mxu1 %v1075_v36  ;;  %596 = vmatmul.f32.vlgmr.msrb.gmra.mxu0 %v542_v51 }
  0x4a   :  { %666 = vmatmul.f32.vlgmr.msrb.gmra.mxu3 %v541_v48  ;;  %716 = vmatpush.xpose.msra.mxu1 %v715_v5 }
  0x4b   :  { %644 = vmatmul.f32.vlgmr.msrb.gmra.mxu2 %v541_v48  ;;  %788 = vmatpush.xpose.msrb.mxu0 %v713_v62 }
  0x4c   :  { %832 = vmatpush.xpose.msrb.mxu2 %v831_v57  ;;  %862 = vmatpush.xpose.msrb.mxu3 %v861_v7 }
  0x51   :  { %620 = vmatmul.f32.vlgmr.msrb.gmra.mxu1 %v543_v56  ;;  %692 = vmatmul.f32.vlgmr.msra.gmra.mxu0 %v691_v10 }
  0x52   :  { %766 = vmatmul.f32.vlgmr.msra.gmra.mxu3 %v689_v4  ;;  %810 = vmatpush.xpose.msrb.mxu1 %v685_v55 }
  0x53   :  { %742 = vmatmul.f32.vlgmr.msra.gmra.mxu2 %v688_v1  ;;  %885 = vmatpush.xpose.msra.mxu0 %v858_v60 }
  0x54   :  { %934 = vmatpush.xpose.msra.mxu2 %v859_v0  ;;  %956 = vmatpush.xpose.msra.mxu3 %v831_v57 }
  0x59   :  { %718 = vmatmul.f32.vlgmr.msra.gmra.mxu1 %v687_v61  ;;  %790 = vmatmul.f32.vlgmr.msrb.gmra.mxu0 %v687_v61 }
  0x5a   :  { %864 = vmatmul.f32.vlgmr.msrb.gmra.mxu3 %v833_v6  ;;  %908 = vmatpush.xpose.msra.mxu1 %v831_v57 }
  0x5b   :  { %838 = vmatmul.f32.vlgmr.msrb.gmra.mxu2 %v837_v13 }
  0x61   :  { %812 = vmatmul.f32.vlgmr.msrb.gmra.mxu1 %v687_v61  ;;  %888 = vmatmul.f32.vlgmr.msra.gmra.mxu0 %v834_v9 }
  0x62   :  { %958 = vmatmul.f32.vlgmr.msra.gmra.mxu3 %v833_v6 }
  0x63   :  { %936 = vmatmul.f32.vlgmr.msra.gmra.mxu2 %v833_v6 }
  0x69   :  { %912 = vmatmul.f32.vlgmr.msra.gmra.mxu1 %v835_v11 }
  0x7e   :  { %v50_v15 = vpop.permute.xlu0 %49 }
  0x9e   :  { %v109_v14 = vpop.f32.mrf.mxu0 }
  0x9f   :  { %v110_v16 = vadd.f32 %v109_v14, %v50_v15 }
  0xa4   :  { %v183_v17 = vpop.f32.mrf.mxu3 }
  0xa6   :  { %v135_v18 = vpop.f32.mrf.mxu1  ;;  %v159_v19 = vpop.f32.mrf.mxu2 }
  0xa7   :  { %v136_v20 = vadd.f32 %v135_v18, %v110_v16  ;;  %v207_v21 = vpop.f32.mrf.mxu0 }
  0xa9   :  { %v160_v22 = vadd.f32 %v159_v19, %v136_v20 }
  0xab   :  { %v184_v23 = vadd.f32 %v183_v17, %v160_v22 }
  0xad   :  { %v208_v24 = vadd.f32 %v207_v21, %v184_v23  ;;  %v281_v25 = vpop.f32.mrf.mxu3 }
  0xae   :  { %v229_v26 = vpop.f32.mrf.mxu1  ;;  %v255_v27 = vpop.f32.mrf.mxu2 }
  0xaf   :  { %v230_v28 = vadd.f32 %v229_v26, %v208_v24  ;;  %v305_v29 = vpop.f32.mrf.mxu0 }
  0xb1   :  { %v256_v30 = vadd.f32 %v255_v27, %v230_v28 }
  0xb3   :  { %v282_v31 = vadd.f32 %v281_v25, %v256_v30 }
  0xb5   :  { %v306_v32 = vadd.f32 %v305_v29, %v282_v31  ;;  %v375_v33 = vpop.f32.mrf.mxu3 }
  0xb6   :  { %v329_v34 = vpop.f32.mrf.mxu1  ;;  %v353_v35 = vpop.f32.mrf.mxu2 }
  0xb7   :  { %v330_v36 = vadd.f32 %v329_v34, %v306_v32  ;;  %v401_v37 = vpop.f32.mrf.mxu0 }
  0xb9   :  { %v354_v38 = vadd.f32 %v353_v35, %v330_v36 }
  0xbb   :  { %v376_v39 = vadd.f32 %v375_v33, %v354_v38 }
  0xbd   :  { %v402_v40 = vadd.f32 %v401_v37, %v376_v39  ;;  %v475_v41 = vpop.f32.mrf.mxu3 }
  0xbe   :  { %v427_v42 = vpop.f32.mrf.mxu1  ;;  %v451_v43 = vpop.f32.mrf.mxu2 }
  0xbf   :  { %v428_v44 = vadd.f32 %v427_v42, %v402_v40  ;;  %v499_v45 = vpop.f32.mrf.mxu0 }
  0xc1   :  { %v452_v46 = vadd.f32 %v451_v43, %v428_v44 }
  0xc3   :  { %v476_v47 = vadd.f32 %v475_v41, %v452_v46 }
  0xc5   :  { %v500_v48 = vadd.f32 %v499_v45, %v476_v47  ;;  %v573_v49 = vpop.f32.mrf.mxu3 }
  0xc6   :  { %v521_v50 = vpop.f32.mrf.mxu1  ;;  %v547_v51 = vpop.f32.mrf.mxu2 }
  0xc7   :  { %v522_v52 = vadd.f32 %v521_v50, %v500_v48  ;;  %v597_v53 = vpop.f32.mrf.mxu0 }
  0xc9   :  { %v548_v54 = vadd.f32 %v547_v51, %v522_v52 }
  0xcb   :  { %v574_v55 = vadd.f32 %v573_v49, %v548_v54 }
  0xcd   :  { %v598_v56 = vadd.f32 %v597_v53, %v574_v55  ;;  %v667_v57 = vpop.f32.mrf.mxu3 }
  0xce   :  { %v621_v58 = vpop.f32.mrf.mxu1  ;;  %v645_v59 = vpop.f32.mrf.mxu2 }
  0xcf   :  { %v622_v60 = vadd.f32 %v621_v58, %v598_v56  ;;  %v693_v61 = vpop.f32.mrf.mxu0 }
  0xd1   :  { %v646_v62 = vadd.f32 %v645_v59, %v622_v60 }
  0xd3   :  { %v668_v63 = vadd.f32 %v667_v57, %v646_v62 }
  0xd5   :  { %v694_v0 = vadd.f32 %v693_v61, %v668_v63  ;;  %v767_v1 = vpop.f32.mrf.mxu3 }
  0xd6   :  { %v719_v2 = vpop.f32.mrf.mxu1  ;;  %v743_v3 = vpop.f32.mrf.mxu2 }
  0xd7   :  { %v720_v4 = vadd.f32 %v719_v2, %v694_v0  ;;  %v791_v5 = vpop.f32.mrf.mxu0 }
  0xd9   :  { %v744_v6 = vadd.f32 %v743_v3, %v720_v4 }
  0xdb   :  { %v768_v7 = vadd.f32 %v767_v1, %v744_v6 }
  0xdd   :  { %v792_v8 = vadd.f32 %v791_v5, %v768_v7  ;;  %v865_v9 = vpop.f32.mrf.mxu3 }
  0xde   :  { %v813_v10 = vpop.f32.mrf.mxu1  ;;  %v839_v11 = vpop.f32.mrf.mxu2 }
  0xdf   :  { %v814_v12 = vadd.f32 %v813_v10, %v792_v8  ;;  %v889_v14 = vpop.f32.mrf.mxu0 }
  0xe1   :  { %v840_v13 = vadd.f32 %v839_v11, %v814_v12 }
  0xe3   :  { %v866_v15 = vadd.f32 %v865_v9, %v840_v13 }
  0xe5   :  { %v890_v16 = vadd.f32 %v889_v14, %v866_v15  ;;  %v959_v20 = vpop.f32.mrf.mxu3 }
  0xe6   :  { %v913_v17 = vpop.f32.mrf.mxu1  ;;  %v937_v18 = vpop.f32.mrf.mxu2 }
  0xe7   :  { %v914_v19 = vadd.f32 %v913_v17, %v890_v16 }
  0xe9   :  { %v938_v21 = vadd.f32 %v937_v18, %v914_v19 }
  0xeb   :  { %v960_v22 = vadd.f32 %v959_v20, %v938_v21 }
  0xed   :  { %963 = vst.msk [vmem:[%s1107_s3] sm:$0x3] %vm962_vm0, %v960_v22 }
  0xee   :  { %968 = vsyncpa [#allocation3], 1 }
  0xef   :  { %969 = vsyncpa [#allocation5], 1 }

</bundles_post_ra>
